<compile_context>
chip_gen: v7x
topology: tpu7x:2x2x1
jax: 0.10.0
libtpu: 0.0.40
codegen_flags: <defaults>
</compile_context>

<pallas_src>
import jax
import jax.numpy as jnp
from jax.experimental import pallas as pl
from jax.experimental.pallas import tpu as pltpu

_MIB = 1024 * 1024


# ----------------------------------------------------------------------------
# Kernel
# ----------------------------------------------------------------------------
def time_embedding_kernel(x_ref, w1_ref, b1_ref, w2_ref, b2_ref, o_ref):
    # ---- linear1 over the full hidden width (tiny; recomputed per N-tile,
    #      cheap vs. the w2 DMA it hides under, and safe under "parallel").
    x = x_ref[...].astype(jnp.bfloat16)
    h = jnp.dot(x, w1_ref[...], preferred_element_type=jnp.float32)
    h = h + b1_ref[...]                      # f32 bias, broadcast over batch
    # ---- SiLU in f32: sigmoid -> EUP, mul -> VPU (both hidden under DMA).
    h = h * jax.nn.sigmoid(h)
    # ---- linear2: this grid step's contiguous column block of w2.
    #      w2_ref is (1, K, tn); leading dim is the block index (== squeezed).
    out = jnp.dot(h.astype(jnp.bfloat16), w2_ref[0],
                  preferred_element_type=jnp.float32)
    o_ref[...] = (out + b2_ref[...]).astype(o_ref.dtype)


# ----------------------------------------------------------------------------
# Planning helpers (generation-aware tile choice, weight pre-blocking)
# ----------------------------------------------------------------------------
def _round_up(x, m):
    return (x + m - 1) // m * m


def _vmem_capacity_bytes():
    try:
        return int(pltpu.get_tpu_info().vmem_capacity_bytes)
    except Exception:
        return 64 * _MIB  # conservative default (v7x per-core figure)


def plan_tn(n_out, w_itemsize=2, vmem_capacity=None):
    """Column-tile width for linear2.

    Prefer grid_n == 2 (even split across v7x's two TensorCores; only two
    pipeline steps on single-core v5e/v6e).  Fall back to more steps only if
    the double-buffered w2 tile would blow the VMEM budget, and to a single
    step for hidden widths with no lane-aligned split.
    """
    if vmem_capacity is None:
        vmem_capacity = _vmem_capacity_bytes()
    budget = min(24 * _MIB, vmem_capacity // 2)   # for the 2x-buffered w2 tile

    def fits(tn):
        return 2 * n_out * tn * w_itemsize <= budget

    for g in (2, 4, 8, 16, 32, 64):
        tn = n_out // g
        if n_out % g == 0 and tn % 128 == 0 and fits(tn):
            return tn
    if fits(n_out):
        return n_out            # single step: fine on single-TC chips
    return 128


def preblock_params(w2, b2, tn=None, w_dtype=jnp.bfloat16):
    """Pad linear2's output columns to a lane multiple and re-lay w2 as
    [grid_n, K, tn] so each grid step's weight tile is one contiguous DMA.
    Call once at parameter-load time, not per forward call."""
    k, n = w2.shape
    n_pad = _round_up(n, 128)
    if tn is None:
        tn = plan_tn(n_pad, jnp.dtype(w_dtype).itemsize)
    n_pad = _round_up(n_pad, tn)
    grid_n = n_pad // tn
    w2p = jnp.zeros((k, n_pad), w_dtype).at[:, :n].set(w2.astype(w_dtype))
    b2p = jnp.zeros((1, n_pad), jnp.float32).at[:, :n].set(
        b2.reshape(1, -1).astype(jnp.float32))
    w2_blocked = w2p.reshape(k, grid_n, tn).transpose(1, 0, 2)
    return w2_blocked, b2p


# ----------------------------------------------------------------------------
# Forward wrapper
# ----------------------------------------------------------------------------
def time_embedding_forward(time, w1, b1, w2, b2, *,
                           single_buffer_invariants=True):
    """time: [B, n_embed]; w1: [n_embed, 4n] (bf16); b1: [1, 4n] f32.
    w2: either [4n, 4n] (blocked internally; convenient but pays a one-off
    transform per call) or pre-blocked [grid_n, 4n, tn] from preblock_params.
    b2: [1, 4n] (or padded [1, grid_n*tn] when w2 is pre-blocked).
    Returns [B, 4n] in time.dtype."""
    B, n_embed = time.shape
    n_hidden = w1.shape[1]
    b1 = b1.reshape(1, n_hidden).astype(jnp.float32)

    if w2.ndim == 2:
        w2_blocked, b2 = preblock_params(w2, b2, w_dtype=w1.dtype)
    else:
        w2_blocked = w2
        b2 = b2.reshape(1, -1).astype(jnp.float32)
    grid_n, k2, tn = w2_blocked.shape
    assert k2 == n_hidden
    n_out = grid_n * tn
    assert b2.shape == (1, n_out)

    w_isz = jnp.dtype(w1.dtype).itemsize
    x_isz = jnp.dtype(time.dtype).itemsize
    inv_buf = 1 if single_buffer_invariants else 2

    # Explicit VMEM limit: double-buffered w2/out/b2 tiles + resident
    # invariants + 2 MiB slack (covers v5e's 16 MiB scoped default).
    needed = (2 * n_hidden * tn * jnp.dtype(w2_blocked.dtype).itemsize
              + inv_buf * (n_embed * n_hidden * w_isz
                           + B * n_embed * x_isz + n_hidden * 4)
              + 2 * (tn * 4 + B * tn * x_isz)
              + 2 * _MIB)
    vmem_cap = _vmem_capacity_bytes()
    vmem_limit = int(min(max(needed, 32 * _MIB),
                         max(vmem_cap - 8 * _MIB, needed)))

    nbytes = lambda a: a.size * a.dtype.itemsize
    cost = pl.CostEstimate(
        # layer-1 (+ SiLU) is recomputed once per column tile.
        flops=2 * B * n_embed * n_hidden * grid_n + 2 * B * n_hidden * n_out,
        transcendentals=B * n_hidden * grid_n,
        # advisory; x/w1/b1 are re-read once per core under core-parallelism.
        bytes_accessed=(nbytes(time) + nbytes(w1) + nbytes(b1)
                        + nbytes(w2_blocked) + nbytes(b2)
                        + B * n_out * x_isz),
    )

    def build(single_buf):
        inv = dict(pipeline_mode=pl.Buffered(1)) if single_buf else {}
        in_specs = [
            # index-invariant: DMA'd once per core, stay resident.
            pl.BlockSpec((B, n_embed), lambda j: (0, 0), **inv),
            pl.BlockSpec((n_embed, n_hidden), lambda j: (0, 0), **inv),
            pl.BlockSpec((1, n_hidden), lambda j: (0, 0), **inv),
            # streamed, contiguous column blocks of the second-layer weight.
            pl.BlockSpec((1, n_hidden, tn), lambda j: (j, 0, 0)),
            pl.BlockSpec((1, tn), lambda j: (0, j)),
        ]
        return pl.pallas_call(
            time_embedding_kernel,
            out_shape=jax.ShapeDtypeStruct((B, n_out), time.dtype),
            grid_spec=pltpu.PrefetchScalarGridSpec(
                num_scalar_prefetch=0,
                grid=(grid_n,),
                in_specs=in_specs,
                out_specs=pl.BlockSpec((B, tn), lambda j: (0, j)),
            ),
            compiler_params=pltpu.CompilerParams(
                # independent output column blocks -> split across TCs on v7x
                # (no-op on single-core v5e/v6e).
                dimension_semantics=("parallel",),
                vmem_limit_bytes=vmem_limit,
            ),
            cost_estimate=cost,
        )

    try:
        out = build(single_buffer_invariants)(time, w1, b1, w2_blocked, b2)
    except Exception:
        if not single_buffer_invariants:
            raise
        # Fallback if this toolchain rejects Buffered(1): double-buffer the
        # (small) invariant inputs instead.
        out = build(False)(time, w1, b1, w2_blocked, b2)
    return out[:, :n_hidden]


# ----------------------------------------------------------------------------
# Params + reference
# ----------------------------------------------------------------------------
def init_params(key, n_embed, weight_dtype=jnp.bfloat16):
    """nn.Linear-shaped params, weights stored [in, out] in bf16, biases f32."""
    n_hidden = 4 * n_embed
    k1, k2, k3, k4 = jax.random.split(key, 4)
    w1 = (0.1 * jax.random.normal(k1, (n_embed, n_hidden), jnp.float32)
          ).astype(weight_dtype)
    b1 = 0.1 * jax.random.normal(k2, (1, n_hidden), jnp.float32)
    w2 = (0.1 * jax.random.normal(k3, (n_hidden, n_hidden), jnp.float32)
          ).astype(weight_dtype)
    b2 = 0.1 * jax.random.normal(k4, (1, n_hidden), jnp.float32)
    return w1, b1, w2, b2


def reference_forward(time, w1, b1, w2, b2):
    # Same numerics as the kernel: bf16 dot inputs, f32 accumulation, f32 SiLU.
    h = jnp.dot(time.astype(w1.dtype), w1, preferred_element_type=jnp.float32)
    h = h + b1.reshape(1, -1).astype(jnp.float32)
    h = h * jax.nn.sigmoid(h)
    out = jnp.dot(h.astype(w2.dtype), w2, preferred_element_type=jnp.float32)
    out = out + b2.reshape(1, -1).astype(jnp.float32)
    return out.astype(time.dtype)


if __name__ == "__main__":
    # Per the perf review, the call site batches the CFG cond/uncond timesteps
    # (and several diffusion steps) so the weight stream is amortised: B = 8.
    B = 8
    n_embed = 64            # -> hidden = 256 -> tn = 128, grid_n = 2

    key = jax.random.PRNGKey(0)
    kx, kp = jax.random.split(key)
    t = jax.random.normal(kx, (B, n_embed), jnp.float32)
    w1, b1, w2, b2 = init_params(kp, n_embed)

    # One-time weight re-layout so every w2 tile DMA is contiguous.
    w2_blocked, b2_padded = preblock_params(w2, b2, w_dtype=w1.dtype)

    out = time_embedding_forward(t, w1, b1, w2_blocked, b2_padded)
    out = jax.block_until_ready(out)

    ref = reference_forward(t, w1, b1, w2, b2)
    assert out.shape == (B, 4 * n_embed), out.shape
    assert jnp.allclose(out, ref, atol=1e-2, rtol=1e-2), (
        "mismatch vs reference, max abs err = %f"
        % float(jnp.max(jnp.abs(out - ref))))

    print("KERNEL_OK")
</pallas_src>

<mosaic_0001>
module attributes {stable_mosaic.version = 11 : i64} {
  func.func @time_embedding_kernel(%arg0: i32, %arg1: memref<8x64xf32, #tpu.memory_space<vmem>>, %arg2: memref<64x256xbf16, #tpu.memory_space<vmem>>, %arg3: memref<1x256xf32, #tpu.memory_space<vmem>>, %arg4: memref<1x256x128xbf16, #tpu.memory_space<vmem>>, %arg5: memref<1x128xf32, #tpu.memory_space<vmem>>, %arg6: memref<8x128xf32, #tpu.memory_space<vmem>>) attributes {dimension_semantics = [#tpu.dimension_semantics<parallel>], iteration_bounds = array<i64: 2>, scalar_prefetch = 0 : i64, scratch_operands = 0 : i64, tpu.core_type = #tpu.core_type<tc>, window_params = [{pipeline_mode = #tpu.pipeline_mode<synchronous>, transform_indices = @transform_0, window_bounds = array<i64: 8, 64>}, {pipeline_mode = #tpu.pipeline_mode<synchronous>, transform_indices = @transform_1, window_bounds = array<i64: 64, 256>}, {pipeline_mode = #tpu.pipeline_mode<synchronous>, transform_indices = @transform_2, window_bounds = array<i64: 1, 256>}, {transform_indices = @transform_3, window_bounds = array<i64: 1, 256, 128>}, {transform_indices = @transform_4, window_bounds = array<i64: 1, 128>}, {transform_indices = @transform_5, window_bounds = array<i64: 8, 128>}]} {
    %c0 = arith.constant 0 : index
    %c0_0 = arith.constant 0 : index
    %0 = vector.load %arg1[%c0, %c0_0] : memref<8x64xf32, #tpu.memory_space<vmem>>, vector<8x64xf32>
    %1 = arith.truncf %0 : vector<8x64xf32> to vector<8x64xbf16>
    %c0_1 = arith.constant 0 : index
    %c0_2 = arith.constant 0 : index
    %2 = vector.load %arg2[%c0_1, %c0_2] : memref<64x256xbf16, #tpu.memory_space<vmem>>, vector<64x256xbf16>
    %cst = arith.constant dense<0.000000e+00> : vector<8x256xf32>
    %3 = tpu.matmul %1, %2, %cst {dimension_numbers = #tpu.dot_dimension_numbers<[1], [0], [0], [1], [0, 0, 1, 1], [], []>} : vector<8x64xbf16>, vector<64x256xbf16>, vector<8x256xf32> -> vector<8x256xf32>
    %c0_3 = arith.constant 0 : index
    %c0_4 = arith.constant 0 : index
    %4 = vector.load %arg3[%c0_3, %c0_4] : memref<1x256xf32, #tpu.memory_space<vmem>>, vector<1x256xf32>
    %5 = vector.broadcast %4 : vector<1x256xf32> to vector<8x256xf32>
    %6 = arith.addf %3, %5 : vector<8x256xf32>
    %7 = arith.negf %6 : vector<8x256xf32>
    %8 = math.exp %7 : vector<8x256xf32>
    %cst_5 = arith.constant 1.000000e+00 : f32
    %9 = vector.broadcast %cst_5 : f32 to vector<8x256xf32>
    %10 = arith.addf %9, %8 : vector<8x256xf32>
    %11 = arith.divf %9, %10 : vector<8x256xf32>
    %12 = arith.mulf %6, %11 : vector<8x256xf32>
    %13 = arith.truncf %12 : vector<8x256xf32> to vector<8x256xbf16>
    %c0_6 = arith.constant 0 : index
    %c0_7 = arith.constant 0 : index
    %c0_8 = arith.constant 0 : index
    %14 = vector.load %arg4[%c0_6, %c0_7, %c0_8] : memref<1x256x128xbf16, #tpu.memory_space<vmem>>, vector<1x256x128xbf16>
    %15 = vector.shape_cast %14 : vector<1x256x128xbf16> to vector<256x128xbf16>
    %cst_9 = arith.constant dense<0.000000e+00> : vector<8x128xf32>
    %16 = tpu.matmul %13, %15, %cst_9 {dimension_numbers = #tpu.dot_dimension_numbers<[1], [0], [0], [1], [0, 0, 1, 1], [], []>} : vector<8x256xbf16>, vector<256x128xbf16>, vector<8x128xf32> -> vector<8x128xf32>
    %c0_10 = arith.constant 0 : index
    %c0_11 = arith.constant 0 : index
    %17 = vector.load %arg5[%c0_10, %c0_11] : memref<1x128xf32, #tpu.memory_space<vmem>>, vector<1x128xf32>
    %18 = vector.broadcast %17 : vector<1x128xf32> to vector<8x128xf32>
    %19 = arith.addf %16, %18 : vector<8x128xf32>
    %c0_12 = arith.constant 0 : index
    %c0_13 = arith.constant 0 : index
    %20 = vector.load %arg6[%c0_12, %c0_13] : memref<8x128xf32, #tpu.memory_space<vmem>>, vector<8x128xf32>
    tpu.vector_store %arg6[%c0_12, %c0_13], %19 {strides = array<i32>} : memref<8x128xf32, #tpu.memory_space<vmem>>, vector<8x128xf32>,
    return
  }
  func.func @transform_0(%arg0: i32) -> (i32, i32) {
    %c0_i32 = arith.constant 0 : i32
    %c0_i32_0 = arith.constant 0 : i32
    %c0_i32_1 = arith.constant 0 : i32
    return %c0_i32, %c0_i32_0 : i32, i32
  }
  func.func @transform_1(%arg0: i32) -> (i32, i32) {
    %c0_i32 = arith.constant 0 : i32
    %c0_i32_0 = arith.constant 0 : i32
    %c0_i32_1 = arith.constant 0 : i32
    return %c0_i32, %c0_i32_0 : i32, i32
  }
  func.func @transform_2(%arg0: i32) -> (i32, i32) {
    %c0_i32 = arith.constant 0 : i32
    %c0_i32_0 = arith.constant 0 : i32
    %c0_i32_1 = arith.constant 0 : i32
    return %c0_i32, %c0_i32_0 : i32, i32
  }
  func.func @transform_3(%arg0: i32) -> (i32, i32, i32) {
    %c0_i32 = arith.constant 0 : i32
    %c0_i32_0 = arith.constant 0 : i32
    %c0_i32_1 = arith.constant 0 : i32
    return %arg0, %c0_i32, %c0_i32_0 : i32, i32, i32
  }
  func.func @transform_4(%arg0: i32) -> (i32, i32) {
    %c0_i32 = arith.constant 0 : i32
    %c0_i32_0 = arith.constant 0 : i32
    return %c0_i32, %arg0 : i32, i32
  }
  func.func @transform_5(%arg0: i32) -> (i32, i32) {
    %c0_i32 = arith.constant 0 : i32
    %c0_i32_0 = arith.constant 0 : i32
    return %c0_i32, %arg0 : i32, i32
  }
}

module attributes {stable_mosaic.version = 11 : i64} {
  func.func @time_embedding_kernel(%arg0: i32, %arg1: memref<8x64xf32, #tpu.memory_space<vmem>>, %arg2: memref<64x256xbf16, #tpu.memory_space<vmem>>, %arg3: memref<1x256xf32, #tpu.memory_space<vmem>>, %arg4: memref<1x256x128xbf16, #tpu.memory_space<vmem>>, %arg5: memref<1x128xf32, #tpu.memory_space<vmem>>, %arg6: memref<8x128xf32, #tpu.memory_space<vmem>>) attributes {dimension_semantics = [#tpu.dimension_semantics<parallel>], iteration_bounds = array<i64: 2>, scalar_prefetch = 0 : i64, scratch_operands = 0 : i64, tpu.core_type = #tpu.core_type<tc>, window_params = [{pipeline_mode = #tpu.pipeline_mode<synchronous>, transform_indices = @transform_0, window_bounds = array<i64: 8, 64>}, {pipeline_mode = #tpu.pipeline_mode<synchronous>, transform_indices = @transform_1, window_bounds = array<i64: 64, 256>}, {pipeline_mode = #tpu.pipeline_mode<synchronous>, transform_indices = @transform_2, window_bounds = array<i64: 1, 256>}, {transform_indices = @transform_3, window_bounds = array<i64: 1, 256, 128>}, {transform_indices = @transform_4, window_bounds = array<i64: 1, 128>}, {transform_indices = @transform_5, window_bounds = array<i64: 8, 128>}]} {
    %c0 = arith.constant 0 : index
    %c0_0 = arith.constant 0 : index
    %0 = vector.load %arg1[%c0, %c0_0] : memref<8x64xf32, #tpu.memory_space<vmem>>, vector<8x64xf32>
    %1 = arith.truncf %0 : vector<8x64xf32> to vector<8x64xbf16>
    %c0_1 = arith.constant 0 : index
    %c0_2 = arith.constant 0 : index
    %2 = vector.load %arg2[%c0_1, %c0_2] : memref<64x256xbf16, #tpu.memory_space<vmem>>, vector<64x256xbf16>
    %cst = arith.constant dense<0.000000e+00> : vector<8x256xf32>
    %3 = tpu.matmul %1, %2, %cst {dimension_numbers = #tpu.dot_dimension_numbers<[1], [0], [0], [1], [0, 0, 1, 1], [], []>} : vector<8x64xbf16>, vector<64x256xbf16>, vector<8x256xf32> -> vector<8x256xf32>
    %c0_3 = arith.constant 0 : index
    %c0_4 = arith.constant 0 : index
    %4 = vector.load %arg3[%c0_3, %c0_4] : memref<1x256xf32, #tpu.memory_space<vmem>>, vector<1x256xf32>
    %5 = vector.broadcast %4 : vector<1x256xf32> to vector<8x256xf32>
    %6 = arith.addf %3, %5 : vector<8x256xf32>
    %7 = arith.negf %6 : vector<8x256xf32>
    %8 = math.exp %7 : vector<8x256xf32>
    %cst_5 = arith.constant 1.000000e+00 : f32
    %9 = vector.broadcast %cst_5 : f32 to vector<8x256xf32>
    %10 = arith.addf %9, %8 : vector<8x256xf32>
    %11 = arith.divf %9, %10 : vector<8x256xf32>
    %12 = arith.mulf %6, %11 : vector<8x256xf32>
    %13 = arith.truncf %12 : vector<8x256xf32> to vector<8x256xbf16>
    %c0_6 = arith.constant 0 : index
    %c0_7 = arith.constant 0 : index
    %c0_8 = arith.constant 0 : index
    %14 = vector.load %arg4[%c0_6, %c0_7, %c0_8] : memref<1x256x128xbf16, #tpu.memory_space<vmem>>, vector<1x256x128xbf16>
    %15 = vector.shape_cast %14 : vector<1x256x128xbf16> to vector<256x128xbf16>
    %cst_9 = arith.constant dense<0.000000e+00> : vector<8x128xf32>
    %16 = tpu.matmul %13, %15, %cst_9 {dimension_numbers = #tpu.dot_dimension_numbers<[1], [0], [0], [1], [0, 0, 1, 1], [], []>} : vector<8x256xbf16>, vector<256x128xbf16>, vector<8x128xf32> -> vector<8x128xf32>
    %c0_10 = arith.constant 0 : index
    %c0_11 = arith.constant 0 : index
    %17 = vector.load %arg5[%c0_10, %c0_11] : memref<1x128xf32, #tpu.memory_space<vmem>>, vector<1x128xf32>
    %18 = vector.broadcast %17 : vector<1x128xf32> to vector<8x128xf32>
    %19 = arith.addf %16, %18 : vector<8x128xf32>
    %c0_12 = arith.constant 0 : index
    %c0_13 = arith.constant 0 : index
    %20 = vector.load %arg6[%c0_12, %c0_13] : memref<8x128xf32, #tpu.memory_space<vmem>>, vector<8x128xf32>
    tpu.vector_store %arg6[%c0_12, %c0_13], %19 {strides = array<i32>} : memref<8x128xf32, #tpu.memory_space<vmem>>, vector<8x128xf32>,
    return
  }
  func.func @transform_0(%arg0: i32) -> (i32, i32) {
    %c0_i32 = arith.constant 0 : i32
    %c0_i32_0 = arith.constant 0 : i32
    %c0_i32_1 = arith.constant 0 : i32
    return %c0_i32, %c0_i32_0 : i32, i32
  }
  func.func @transform_1(%arg0: i32) -> (i32, i32) {
    %c0_i32 = arith.constant 0 : i32
    %c0_i32_0 = arith.constant 0 : i32
    %c0_i32_1 = arith.constant 0 : i32
    return %c0_i32, %c0_i32_0 : i32, i32
  }
  func.func @transform_2(%arg0: i32) -> (i32, i32) {
    %c0_i32 = arith.constant 0 : i32
    %c0_i32_0 = arith.constant 0 : i32
    %c0_i32_1 = arith.constant 0 : i32
    return %c0_i32, %c0_i32_0 : i32, i32
  }
  func.func @transform_3(%arg0: i32) -> (i32, i32, i32) {
    %c0_i32 = arith.constant 0 : i32
    %c0_i32_0 = arith.constant 0 : i32
    %c0_i32_1 = arith.constant 0 : i32
    return %arg0, %c0_i32, %c0_i32_0 : i32, i32, i32
  }
  func.func @transform_4(%arg0: i32) -> (i32, i32) {
    %c0_i32 = arith.constant 0 : i32
    %c0_i32_0 = arith.constant 0 : i32
    return %c0_i32, %arg0 : i32, i32
  }
  func.func @transform_5(%arg0: i32) -> (i32, i32) {
    %c0_i32 = arith.constant 0 : i32
    %c0_i32_0 = arith.constant 0 : i32
    return %c0_i32, %arg0 : i32, i32
  }
}

</mosaic_0001>

<bundles_post_ra>
// kernel: tpu_custom_call.1
= control target key start
LH: loop header
LB: loop body
LE: loop exit
PB: predicated region body
PF: predicated region fallthrough
CT: control target
= control target key end

     0   :  { %s1332_s0 = inlined_call_operand.hbm [shape: f32[8,64], index: 0, kind: input, shape index: {}]   ;;  %s1333_s1 = inlined_call_operand.hbm [shape: bf16[64,256], index: 1, kind: input, shape index: {}]   ;;  %s1334_s2 = inlined_call_operand.vmem [shape: f32[1,256], index: 2, kind: input, shape index: {}]   ;;  %s1335_s3 = inlined_call_operand.hbm [shape: bf16[2,256,128], index: 3, kind: input, shape index: {}]   ;;  %s1336_s4 = inlined_call_operand.vmem [shape: f32[1,256], index: 4, kind: input, shape index: {}]   ;;  %s1337_s5 = inlined_call_operand.hbm [shape: f32[8,256], index: 5, kind: output, shape index: {}]  }
   0x1   :  { %1343 = sst [smem:[#allocation14_spill]] %s1332_s0 }
   0x2   :  { %10 = vsyncpa [#allocation3], 0 }
   0x3   :  { %11 = vsyncpa [#allocation6], 0 }
   0x4   :  { %12 = vsyncpa [#allocation4], 0 }
   0x5   :  { %14 = vsyncpa [#allocation4 + $0x1], 0  ;;  %s1071_s18 = smov 0   ;;  %s1073_s19 = smov 0  }
   0x6   :  { %s1075_s20 = smov 0   ;;  %s1077_s21 = smov 0  }
   0x7 LB: > { %s1092_s22 = sadd.s32 4294967295, %s1030_s21   ;;  %s694_s23 = sadd.s32 4294967294, %s1030_s21   ;;  %s1030_s21 = sphi %s1077_s21, %s1368_s21   ;;  %s1026_s20 = sphi %s1075_s20, %s1367_s20   ;;  %s1022_s19 = sphi %s1073_s19, %s1366_s19   ;;  %s1018_s18 = sphi %s1071_s18, %s1365_s18  }
   0x8   : > { %s1096_s24 = sadd.s32 1, %s1030_s21   ;;  %s90_s25 = sadd.s32 1, %s1026_s20 }
   0x9   : > { %s87_s26 = ssub.s32 %s1030_s21, %s1096_s24  ;;  %p97_p0 = scmp.ne.s32.totalorder %s1026_s20, %s1022_s19 }
   0xa   : > { %p88_p1 = scmp.eq.s32.totalorder %s87_s26, 0  ;;  %p98_p2 = scmp.eq.s32.totalorder %s1030_s21, 0 }
   0xb   : > { %p103_p3 = scmp.ne.s32.totalorder %s1022_s19, %s1018_s18  ;;  %p1338_p4 = scmp.eq.s32.totalorder %s1092_s22, 0 }
   0xc   : > { %s1108_s27 = scalar_select %p88_p1, %s1026_s20, %s90_s25  }
   0xd   : > { %p1110_p5 = por %p98_p2, %p97_p0  ;;  %p1116_p6 = por %p1338_p4, %p103_p3 }
   0xe   : > { %1344 = sst [smem:[#allocation13_spill]] %s1108_s27  ;;  %p153_p7 = scmp.eq.s32.totalorder %s1092_s22, 1 }
   0xf   : > { %s1346_s29 = scalar_select %p1116_p6, 1, 0 }
  0x10   : > { %p159_p8 = scmp.eq.s32.totalorder %s694_s23, 1  ;;  %p695_p9 = scmp.ge.s32.totalorder %s1030_s21, 1 }
  0x11   : > { %p166_p10 = scmp.lt.s32.totalorder %s1030_s21, 3  ;;  %p1123_p11 = por %p153_p7, %p97_p0 }
  0x12   : > { %p1127_p12 = por %p159_p8, %p103_p3  ;;  %s1032_s8 = smov [#allocation2]  }
  0x13   : > { %s1347_s30 = scalar_select %p1123_p11, 1, 0 }
  0x14   : > { %s1348_s6 = scalar_select %p1127_p12, 1, 0 }
  0x15   : > { %p1131_p13 = pnand %p695_p9, %p166_p10  ;;  %s179_s9 = sshll.u32 %s1032_s8, 4  ;;  %s180_s9 = int_to_ptr.vmem [resolvable:$true] %s179_s9 }
  0x16   : > { %p791_p4 = scmp.lt.s32.totalorder %s1030_s21, 2  ;;  %p1350_p0 = scmp.eq.s32.totalorder %s1092_s22, 0 }
  0x17   : > { %s1349_s7 = scalar_select %p1131_p13, 1, 0 }
  0x18   : > { %p774_p2 = pneg %p1131_p13  ;;  %p1147_p3 = pnand %p791_p4, %p1110_p5 }
  0x19   : > { %s1033_s12 = smov [#allocation5]   ;;  %s1353_s0 = sld [smem:[#allocation14_spill]] }
  0x1a   : > { %p1141_p7 = pnand %p774_p2, %p1350_p0  ;;  %s189_s13 = sshll.u32 %s1033_s12, 4  ;;  %s1151_s13 = int_to_ptr.vmem [resolvable:$true] %s189_s13 }
  0x1b   : > { %s1352_s11 = scalar_select %p1147_p3, 1, 0 }
  0x1c   : > { %p872_p9 = pneg %p1141_p7 }
  0x1f   : > { %s870_s16 = scalar_lea.hbm %s1353_s0, 128 }
  0x20   : > { %p871_p8 = scmp.ne.s32.totalorder %s1353_s0, %s870_s16  ;;  %p877_p10 = scmp.lt.u32.totalorder %s870_s16, %s1353_s0 }
  0x22   : > { %p873_p4 = pnand %p872_p9, %p871_p8 }
  0x24   : > { %p874_p5 = pneg %p873_p4 }
  0x26   : > { %p879_p2 = pnand %p877_p10, %p874_p5 }
  0x28   : > { %882 = shalt.err (!%p879_p2)
}
  0x29   : > { %s883_s28 = scalar_lea.vmem %s180_s9, 128  ;;  %p891_p11 = scmp.lt.s32.totalorder %s180_s9, %s180_s9 }
  0x2a   : > { %p884_p0 = scmp.ne.s32.totalorder %s180_s9, %s883_s28  ;;  %p892_p6 = scmp.lt.s32.totalorder %s883_s28, %s883_s28 }
  0x2c   : > { %p886_p1 = pnand %p884_p0, %p872_p9  ;;  %p893_p13 = por %p892_p6, %p891_p11 }
  0x2e   : > { %p887_p12 = pneg %p886_p1 }
  0x30   : > { %p894_p3 = pnand %p893_p13, %p887_p12 }
  0x32   : > { %897 = shalt.err (!%p894_p3)
}
  0x33   : > { %777 = dma.hbm_to_vmem [thread:$0]  (!%p1141_p7), %s1353_s0, 128, %s180_s9, [#allocation3]  }
  0x34   : > { %s206_s14 = sand.u32 1, %s1030_s21   ;;  %s898_s17 = scalar_lea.hbm %s1333_s1, 1024 }
  0x35   : > { %p899_p1 = scmp.ne.s32.totalorder %s1333_s1, %s898_s17  ;;  %p905_p12 = scmp.lt.u32.totalorder %s898_s17, %s1333_s1 }
  0x37   : > { %p901_p6 = pnand %p899_p1, %p872_p9 }
  0x39   : > { %p902_p11 = pneg %p901_p6 }
  0x3b   : > { %p907_p13 = pnand %p905_p12, %p902_p11 }
  0x3d   : > { %910 = shalt.err (!%p907_p13)
}
  0x3e   : > { %s911_s9 = scalar_lea.vmem %s1151_s13, 1024  ;;  %p919_p5 = scmp.lt.s32.totalorder %s1151_s13, %s1151_s13 }
  0x3f   : > { %p912_p3 = scmp.ne.s32.totalorder %s1151_s13, %s911_s9  ;;  %p920_p10 = scmp.lt.s32.totalorder %s911_s9, %s911_s9 }
  0x41   : > { %p914_p8 = pnand %p912_p3, %p872_p9  ;;  %p921_p2 = por %p920_p10, %p919_p5 }
  0x43   : > { %p915_p4 = pneg %p914_p8 }
  0x45   : > { %p922_p0 = pnand %p921_p2, %p915_p4 }
  0x47   : > { %925 = shalt.err (!%p922_p0)
}
  0x48   : > { %s1034_s8 = smov 128   ;;  %s1035_s12 = smov 8  }
  0x49   : > { %780 = dma.hbm_to_vmem [thread:$0]  (!%p1141_p7), %s1333_s1, 1024, %s1151_s13, [#allocation6], %s1034_s8, %s1034_s8, %s1035_s12  }
  0x4a   : > { %s208_s17 = sand.u32 1, %s1026_s20   ;;  %s739_s25 = sshll.u32 %s1030_s21, 11 }
  0x4b   : > { %s699_s23 = sshll.u32 %s208_s17, 7  ;;  %s1206_s9 = scalar_lea.hbm %s1335_s3, %s739_s25 }
  0x4c   : > { %s210_s0 = scalar_lea.vmem [#allocation7], %s699_s23  ;;  %s1210_s10 = scalar_lea.sflag [#allocation3], %s206_s14 }
  0x4d   : > { %s217_s27 = sshll.u32 %s210_s0, 4  ;;  %s926_s15 = scalar_lea.hbm %s1206_s9, 2048  ;;  %s1208_s27 = int_to_ptr.vmem [resolvable:$true] %s217_s27 }
  0x4e   : > { %p927_p7 = scmp.ne.s32.totalorder %s1206_s9, %s926_s15  ;;  %p1354_p9 = scmp.ne.s32.totalorder %s1352_s11, 0 }
  0x4f   : > { %s931_s12 = scalar_lea.hbm %s1335_s3, 4096  ;;  %p932_p12 = scmp.lt.u32.totalorder %s1206_s9, %s1335_s3 }
  0x50   : > { %p928_p1 = pneg %p1354_p9  ;;  %p933_p13 = scmp.lt.u32.totalorder %s931_s12, %s926_s15 }
  0x51   : > { %p935_p8 = scmp.lt.u32.totalorder %s926_s15, %s1206_s9 }
  0x52   : > { %p929_p6 = pnand %p928_p1, %p927_p7  ;;  %p934_p3 = por %p933_p13, %p932_p12 }
  0x54   : > { %p930_p11 = pneg %p929_p6  ;;  %p936_p4 = por %p935_p8, %p934_p3 }
  0x56   : > { %p937_p5 = pnand %p936_p4, %p930_p11 }
  0x58   : > { %940 = shalt.err (!%p937_p5)
}
  0x59   : > { %s941_s0 = scalar_lea.vmem %s1208_s27, 2048  ;;  %s1036_s14 = smov [#allocation7]  }
  0x5a   : > { %p942_p10 = scmp.ne.s32.totalorder %s1208_s27, %s941_s0  ;;  %s946_s23 = sshll.u32 %s1036_s14, 4  ;;  %s947_s23 = int_to_ptr.vmem [resolvable:$false] %s946_s23 }
  0x5b   : > { %s948_s25 = scalar_lea.vmem %s947_s23, 4096  ;;  %p949_p7 = scmp.lt.s32.totalorder %s1208_s27, %s947_s23 }
  0x5c   : > { %p944_p2 = pnand %p942_p10, %p928_p1  ;;  %p950_p6 = scmp.lt.s32.totalorder %s948_s25, %s941_s0 }
  0x5e   : > { %p945_p0 = pneg %p944_p2  ;;  %p951_p12 = por %p950_p6, %p949_p7 }
  0x60   : > { %p952_p13 = pnand %p951_p12, %p945_p0 }
  0x62   : > { %955 = shalt.err (!%p952_p13)
}
  0x63   : > { %s1037_s26 = smov 64   ;;  %s1038_s28 = smov 4  }
  0x64   : > { %784 = dma.hbm_to_vmem [thread:$0]  (!%p1354_p9), %s1206_s9, 2048, %s1208_s27, %s1210_s10, %s1037_s26, %s1037_s26, %s1038_s28  }
  0x65   : > { %p1355_p1 = scmp.ne.s32.totalorder %s1349_s7, 0 }
  0x66   : > { %p1356_p11 = scmp.eq.s32.totalorder (!%p1355_p1), %s1092_s22, 0 }
  0x67   : > { %235 = sbr.rel (%p1355_p1) target bundleno = 614 (0x266), region = 40 }
  0x6e   : > { %1001 = dma.done.wait (%p1356_p11), [#allocation3], 128   ;;  %p1357_p3 = pmov %p1356_p11 }
  0x70   : > { %1003 = vsyncadd (%p1357_p3), [#allocation3], 4294967168  ;;  %p1358_p8 = pmov %p1357_p3 }
  0x71   : > { %p1359_p4 = pmov %p1357_p3 }
  0x72   : > { %1005 = dma.done.wait (%p1358_p8), [#allocation6], 1024  }
  0x73   : > { %1007 = vsyncadd (%p1359_p4), [#allocation6], 4294966272  ;;  %s245_s11 = sand.u32 1, %s1092_s22   ;;  %s1250_s27 = sand.u32 1, %s1022_s19  }
  0x74   : > { %s705_s7 = sshll.u32 %s1250_s27, 7  ;;  %s246_s9 = scalar_lea.sflag [#allocation3], %s245_s11 }
  0x75   : > { %s1253_s10 = scalar_lea.vmem [#allocation7], %s705_s7  ;;  %p1360_p9 = scmp.ne.s32.totalorder %s1346_s29, 0 }
  0x77   : > { %1009 = dma.done.wait (%p1360_p9), %s246_s9, 2048  }
  0x78   : > { %1011 = vsyncadd (%p1360_p9), %s246_s9, 4294965248  ;;  %v1039_v0 = vmov 0   ;;  %v834_v1 = vld [vmem:[#allocation5 + $0x4] ss:$8 sps:$4 sm:$0xff]   ;;  %v836_v2 = vld [vmem:[#allocation5] ss:$8 sps:$4 sm:$0xff]   ;;  %v295_v27 = vlaneseq }
  0x79   : > { %381 = vmatprep.mubr.bf16.mxu0 %v1039_v0  ;;  %349 = vmatprep.subr.bf16.mxu0 %v834_v1  ;;  %v837_v3 = vld [vmem:[#allocation5 + $0x14] ss:$8 sps:$4 sm:$0xff]   ;;  %v839_v4 = vld [vmem:[#allocation5 + $0x10] ss:$8 sps:$4 sm:$0xff]   ;;  %v840_v5 = vld [vmem:[#allocation5 + $0x24] ss:$8 sps:$4 sm:$0xff]  }
  0x7a   : > { %350 = vmatpush1.bf16.msra.mxu0 %v836_v2  ;;  %v842_v6 = vld [vmem:[#allocation5 + $0x20] ss:$8 sps:$4 sm:$0xff]   ;;  %v843_v7 = vld [vmem:[#allocation5 + $0x34] ss:$8 sps:$4 sm:$0xff]   ;;  %vm345_vm0 = vcmask 523264   ;;  %v296_v28 = vshrl.u32 %v295_v27, 7 }
  0x7b   : > { %351 = vmatprep.subr.bf16.mxu0 %v837_v3  ;;  %v845_v8 = vld [vmem:[#allocation5 + $0x30] ss:$8 sps:$4 sm:$0xff]   ;;  %v846_v11 = vld [vmem:[%s1253_s10 + $0x40] sm:$0xff]   ;;  %v848_v13 = vld [vmem:[%s1253_s10 + $0x48] sm:$0xff]   ;;  %p279_p5 = scmp.lt.s32.totalorder %s1092_s22, 1  ;;  %s706_s8 = sshll.u32 %s1250_s27, 3 }
  0x7c   : > { %v283_v9 = vld [vmem:[#allocation2] sm:$0xff]  ;;  %v847_v12 = vld [vmem:[%s1253_s10] sm:$0xff]   ;;  %740 = vmatprep.subr.bf16.mxu1 %v846_v11  ;;  %v849_v14 = vld [vmem:[%s1253_s10 + $0x8] sm:$0xff]   ;;  %v297_v29 = vsub.s32 0, %v296_v28  ;;  %v301_v31 = vsub.s32 1, %v296_v28  ;;  %s736_s0 = sshll.u32 %s1092_s22, 7 }
  0x7d   : > { %v284_v10 = vpack.c.bf16 %v283_v9, %v283_v9  ;;  %741 = vmatpush3.bf16.msra.mxu1 %v847_v12  ;;  %v850_v15 = vld [vmem:[%s1253_s10 + $0x50] sm:$0xff]   ;;  %v852_v17 = vld [vmem:[%s1253_s10 + $0x58] sm:$0xff]   ;;  %v854_v19 = vld [vmem:[%s1253_s10 + $0x60] sm:$0xff]   ;;  %s280_s13 = scalar_select %p279_p5, %s1092_s22, 1 }
  0x7e   : > { %352 = vmatpush1.bf16.msra.mxu0 %v839_v4  ;;  %742 = vmatprep.subr.bf16.mxu1 %v848_v13  ;;  %v851_v16 = vld [vmem:[%s1253_s10 + $0x10] sm:$0xff]   ;;  %v853_v18 = vld [vmem:[%s1253_s10 + $0x18] sm:$0xff]   ;;  %v855_v20 = vld [vmem:[%s1253_s10 + $0x20] sm:$0xff]   ;;  %s278_s14 = scalar_lea.vmem [#allocation8], %s706_s8  ;;  %s1288_s28 = scalar_lea.hbm %s1337_s5, %s736_s0 }
  0x7f   : > { %353 = vmatprep.subr.bf16.mxu0 %v840_v5  ;;  %v856_v21 = vld [vmem:[%s1253_s10 + $0x68] sm:$0xff]   ;;  %v858_v23 = vld [vmem:[%s1253_s10 + $0x70] sm:$0xff]   ;;  %v860_v25 = vld [vmem:[%s1253_s10 + $0x78] sm:$0xff]   ;;  %s281_s17 = scalar_lea.vmem %s1336_s4, %s280_s13  ;;  %s596_s23 = sshll.u32 %s278_s14, 4  ;;  %s1290_s23 = int_to_ptr.vmem [resolvable:$true] %s596_s23 }
  0x80   : > { %v857_v22 = vld [vmem:[%s1253_s10 + $0x28] sm:$0xff]   ;;  %v859_v24 = vld [vmem:[%s1253_s10 + $0x30] sm:$0xff]   ;;  %v861_v26 = vld [vmem:[%s1253_s10 + $0x38] sm:$0xff]   ;;  %s583_s11 = scalar_lea.sflag [#allocation4], %s1250_s27  ;;  %s956_s7 = scalar_lea.vmem %s1290_s23, 128 }
  0x81   : > { %743 = vmatpush3.bf16.msra.mxu1 %v849_v14  ;;  %v293_v30 = vld [vmem:[%s1334_s2] sm:$0x3]  ;;  %p957_p10 = scmp.ne.s32.totalorder %s1290_s23, %s956_s7  ;;  %p1361_p2 = scmp.ne.s32.totalorder %s1347_s30, 0 }
  0x82   : > { %354 = vmatpush1.bf16.msra.mxu0 %v842_v6  ;;  %744 = vmatprep.subr.bf16.mxu1 %v850_v15  ;;  %v298_v32 = vrot.slane %v293_v30, %v297_v29  ;;  %v302_v33 = vrot.slane %v293_v30, %v301_v31  ;;  %v718_v53 = vld [vmem:[%s281_s17] ss:$0 sm:$0xff]  ;;  %s1040_s22 = smov [#allocation8]  }
  0x83   : > { %355 = vmatprep.subr.bf16.mxu0 %v843_v7  ;;  %p958_p0 = pnand %p957_p10, %p1361_p2  ;;  %s960_s9 = sshll.u32 %s1040_s22, 4  ;;  %s961_s9 = int_to_ptr.vmem [resolvable:$false] %s960_s9 }
  0x84   : > { %s962_s10 = scalar_lea.vmem %s961_s9, 256  ;;  %p963_p6 = scmp.lt.s32.totalorder %s1290_s23, %s961_s9 }
  0x85   : > { %745 = vmatpush3.bf16.msra.mxu1 %v851_v16  ;;  %p959_p7 = pneg %p958_p0  ;;  %p964_p12 = scmp.lt.s32.totalorder %s962_s10, %s956_s7 }
  0x86   : > { %356 = vmatpush1.bf16.msra.mxu0 %v845_v8  ;;  %746 = vmatprep.subr.bf16.mxu1 %v852_v17 }
  0x87   : > { %p965_p13 = por %p964_p12, %p963_p6 }
  0x89   : > { %715 = vmatmul.mubr.msk.bf16.vlgmr.msra.gmra.mrb[0].mxu0 %vm345_vm0, %v284_v10  ;;  %747 = vmatpush3.bf16.msra.mxu1 %v853_v18  ;;  %p966_p1 = pnand %p965_p13, %p959_p7 }
  0x8a   : > { %748 = vmatprep.subr.bf16.mxu1 %v854_v19 }
  0x8d   : > { %749 = vmatpush3.bf16.msra.mxu1 %v855_v20 }
  0x8e   : > { %750 = vmatprep.subr.bf16.mxu1 %v856_v21 }
  0x91   : > { %751 = vmatpush3.bf16.msra.mxu1 %v857_v22 }
  0x92   : > { %752 = vmatprep.subr.bf16.mxu1 %v858_v23 }
  0x95   : > { %753 = vmatpush3.bf16.msra.mxu1 %v859_v24 }
  0x96   : > { %754 = vmatprep.subr.bf16.mxu1 %v860_v25 }
  0x99   : > { %755 = vmatpush3.bf16.msra.mxu1 %v861_v26 }
 0x15c   : > { %v383_v34 = vpop.f32.mrb[0].mxu0 }
 0x15d   : > { %v384_v35 = vadd.f32 %v383_v34, %v298_v32  ;;  %v385_v36 = vpop.f32.mrb[1].mxu0 }
 0x15e   : > { %v386_v37 = vadd.f32 %v385_v36, %v302_v33  ;;  %v387_v38 = vpop.f32.mrb[2].mxu0 }
 0x15f   : > { %v716_v39 = vmul.f32 -1.442695, %v384_v35  ;;  %v388_v40 = vpop.f32.mrb[3].mxu0 }
 0x160   : > { %v717_v41 = vmul.f32 -1.442695, %v386_v37 }
 0x161   : > { %862 = vpow2.f32 %v716_v39 }
 0x162   : > { %864 = vpow2.f32 %v717_v41 }
 0x16b   : > { %v863_v42 = vpop.eup %862 }
 0x16c   : > { %v865_v43 = vpop.eup %864  ;;  %v396_v44 = vadd.f32 1.0, %v863_v42 }
 0x16d   : > { %v397_v45 = vadd.f32 1.0, %v865_v43 }
 0x16e   : > { %866 = vrcp.f32 %v396_v44 }
 0x16f   : > { %868 = vrcp.f32 %v397_v45 }
 0x178   : > { %v867_v46 = vpop.eup %866 }
 0x179   : > { %v869_v47 = vpop.eup %868  ;;  %v402_v48 = vmul.f32 %v867_v46, %v384_v35 }
 0x17a   : > { %v403_v49 = vmul.f32 %v869_v47, %v386_v37 }
 0x17b   : > { %v404_v51 = vpack.c.bf16 %v402_v48, %v402_v48 }
 0x17c   : > { %v405_v50 = vpack.c.bf16 %v403_v49, %v403_v49 }
 0x17e   : > { %573 = vmatprep.mubr.bf16.mxu1 %v405_v50 }
 0x17f   : > { %574 = vmatmul.mubr.bf16.vlgmr.msra.gmra.mrb[0].mxu1 %v404_v51 }
 0x252   : > { %v756_v52 = vpop.f32.mrb[0].mxu1 }
 0x253   : > { %v757_v54 = vpop.f32.mrb[1].mxu1 }
 0x254   : > { %v758_v55 = vadd.f32 %v757_v54, %v756_v52  ;;  %v759_v56 = vpop.f32.mrb[2].mxu1 }
 0x255   : > { %v760_v57 = vpop.f32.mrb[3].mxu1 }
 0x256   : > { %v576_v58 = vadd.f32 %v758_v55, %v718_v53 }
 0x258   : > { %581 = vst [vmem:[%s278_s14] sm:$0xff] %v576_v58 }
 0x259   : > { %969 = shalt.err (!%p966_p1)
}
 0x25a   : > { %s970_s27 = scalar_lea.hbm %s1288_s28, 128  ;;  %s974_s13 = scalar_lea.hbm %s1337_s5, 256 }
 0x25b   : > { %p971_p11 = scmp.ne.s32.totalorder %s1288_s28, %s970_s27  ;;  %p975_p4 = scmp.lt.u32.totalorder %s1288_s28, %s1337_s5 }
 0x25c   : > { %p976_p9 = scmp.lt.u32.totalorder %s974_s13, %s970_s27  ;;  %p978_p10 = scmp.lt.u32.totalorder %s970_s27, %s1288_s28 }
 0x25d   : > { %p972_p3 = pnand %p971_p11, %p1361_p2 }
 0x25e   : > { %p977_p5 = por %p976_p9, %p975_p4 }
 0x25f   : > { %p973_p8 = pneg %p972_p3 }
 0x260   : > { %p979_p0 = por %p978_p10, %p977_p5 }
 0x262   : > { %p980_p7 = pnand %p979_p0, %p973_p8 }
 0x264   : > { %983 = shalt.err (!%p980_p7)
}
 0x265   : > { %772 = dma.vmem_to_hbm [thread:$0]  (%p1361_p2), %s1290_s23, 128, %s1288_s28, %s583_s11  }
 0x266 PF: > { %s608_s16 = sand.u32 1, %s1018_s18   ;;  %p1362_p6 = scmp.ne.s32.totalorder %s1348_s6, 0 }
 0x267   : > { %p1363_p12 = scmp.ge.s32.totalorder %s1030_s21, 2  ;;  %s609_s17 = scalar_lea.sflag [#allocation4], %s608_s16 }
 0x269   : > { %p786_p13 = pnand %p1363_p12, %p1362_p6 }
 0x26b   : > { %1013 = dma.done.wait (!%p786_p13), %s609_s17, 128  }
 0x26c   : > { %1015 = vsyncadd (!%p786_p13), %s609_s17, 4294967168  ;;  %s1364_s0 = sld [smem:[#allocation13_spill]]  ;;  %p17_p1 = scmp.ge.s32.totalorder %s1096_s24, 4  }
 0x26d   : > { %s1365_s18 = smov %s1022_s19  ;;  %s1366_s19 = smov %s1026_s20 }
 0x26e   : > { %s1368_s21 = smov %s1096_s24  ;;  %19 = sbr.rel (!%p17_p1) target bundleno = 7 (0x7), region = 95 }
 0x272   : > { %s1367_s20 = smov %s1364_s0 }
 0x275   :  { %614 = vsyncpa [#allocation3], 1 }
 0x276   :  { %616 = vsyncpa [#allocation3 + $0x1], 1 }
 0x277   :  { %617 = vsyncpa [#allocation6], 1 }
 0x278   :  { %618 = vsyncpa [#allocation4], 1 }
 0x279   :  { %620 = vsyncpa [#allocation4 + $0x1], 1 }

// kernel: tpu_custom_call.1
= control target key start
LH: loop header
LB: loop body
LE: loop exit
PB: predicated region body
PF: predicated region fallthrough
CT: control target
= control target key end

     0   :  { %s1332_s0 = inlined_call_operand.hbm [shape: f32[8,64], index: 0, kind: input, shape index: {}]   ;;  %s1333_s1 = inlined_call_operand.hbm [shape: bf16[64,256], index: 1, kind: input, shape index: {}]   ;;  %s1334_s2 = inlined_call_operand.vmem [shape: f32[1,256], index: 2, kind: input, shape index: {}]   ;;  %s1335_s3 = inlined_call_operand.hbm [shape: bf16[2,256,128], index: 3, kind: input, shape index: {}]   ;;  %s1336_s4 = inlined_call_operand.vmem [shape: f32[1,256], index: 4, kind: input, shape index: {}]   ;;  %s1337_s5 = inlined_call_operand.hbm [shape: f32[8,256], index: 5, kind: output, shape index: {}]  }
   0x1   :  { %1343 = sst [smem:[#allocation14_spill]] %s1332_s0 }
   0x2   :  { %10 = vsyncpa [#allocation3], 0 }
   0x3   :  { %11 = vsyncpa [#allocation6], 0 }
   0x4   :  { %12 = vsyncpa [#allocation4], 0 }
   0x5   :  { %14 = vsyncpa [#allocation4 + $0x1], 0  ;;  %s1071_s18 = smov 0   ;;  %s1073_s19 = smov 0  }
   0x6   :  { %s1075_s20 = smov 0   ;;  %s1077_s21 = smov 0  }
   0x7 LB: > { %s1092_s22 = sadd.s32 4294967295, %s1030_s21   ;;  %s694_s23 = sadd.s32 4294967294, %s1030_s21   ;;  %s1030_s21 = sphi %s1077_s21, %s1368_s21   ;;  %s1026_s20 = sphi %s1075_s20, %s1367_s20   ;;  %s1022_s19 = sphi %s1073_s19, %s1366_s19   ;;  %s1018_s18 = sphi %s1071_s18, %s1365_s18  }
   0x8   : > { %s1096_s24 = sadd.s32 1, %s1030_s21   ;;  %s90_s25 = sadd.s32 1, %s1026_s20 }
   0x9   : > { %s87_s26 = ssub.s32 %s1030_s21, %s1096_s24  ;;  %p97_p0 = scmp.ne.s32.totalorder %s1026_s20, %s1022_s19 }
   0xa   : > { %p88_p1 = scmp.eq.s32.totalorder %s87_s26, 0  ;;  %p98_p2 = scmp.eq.s32.totalorder %s1030_s21, 0 }
   0xb   : > { %p103_p3 = scmp.ne.s32.totalorder %s1022_s19, %s1018_s18  ;;  %p1338_p4 = scmp.eq.s32.totalorder %s1092_s22, 0 }
   0xc   : > { %s1108_s27 = scalar_select %p88_p1, %s1026_s20, %s90_s25  }
   0xd   : > { %p1110_p5 = por %p98_p2, %p97_p0  ;;  %p1116_p6 = por %p1338_p4, %p103_p3 }
   0xe   : > { %1344 = sst [smem:[#allocation13_spill]] %s1108_s27  ;;  %p153_p7 = scmp.eq.s32.totalorder %s1092_s22, 1 }
   0xf   : > { %s1346_s29 = scalar_select %p1116_p6, 1, 0 }
  0x10   : > { %p159_p8 = scmp.eq.s32.totalorder %s694_s23, 1  ;;  %p695_p9 = scmp.ge.s32.totalorder %s1030_s21, 1 }
  0x11   : > { %p166_p10 = scmp.lt.s32.totalorder %s1030_s21, 3  ;;  %p1123_p11 = por %p153_p7, %p97_p0 }
  0x12   : > { %p1127_p12 = por %p159_p8, %p103_p3  ;;  %s1032_s8 = smov [#allocation2]  }
  0x13   : > { %s1347_s30 = scalar_select %p1123_p11, 1, 0 }
  0x14   : > { %s1348_s6 = scalar_select %p1127_p12, 1, 0 }
  0x15   : > { %p1131_p13 = pnand %p695_p9, %p166_p10  ;;  %s179_s9 = sshll.u32 %s1032_s8, 4  ;;  %s180_s9 = int_to_ptr.vmem [resolvable:$true] %s179_s9 }
  0x16   : > { %p791_p4 = scmp.lt.s32.totalorder %s1030_s21, 2  ;;  %p1350_p0 = scmp.eq.s32.totalorder %s1092_s22, 0 }
  0x17   : > { %s1349_s7 = scalar_select %p1131_p13, 1, 0 }
  0x18   : > { %p774_p2 = pneg %p1131_p13  ;;  %p1147_p3 = pnand %p791_p4, %p1110_p5 }
  0x19   : > { %s1033_s12 = smov [#allocation5]   ;;  %s1353_s0 = sld [smem:[#allocation14_spill]] }
  0x1a   : > { %p1141_p7 = pnand %p774_p2, %p1350_p0  ;;  %s189_s13 = sshll.u32 %s1033_s12, 4  ;;  %s1151_s13 = int_to_ptr.vmem [resolvable:$true] %s189_s13 }
  0x1b   : > { %s1352_s11 = scalar_select %p1147_p3, 1, 0 }
  0x1c   : > { %p872_p9 = pneg %p1141_p7 }
  0x1f   : > { %s870_s16 = scalar_lea.hbm %s1353_s0, 128 }
  0x20   : > { %p871_p8 = scmp.ne.s32.totalorder %s1353_s0, %s870_s16  ;;  %p877_p10 = scmp.lt.u32.totalorder %s870_s16, %s1353_s0 }
  0x22   : > { %p873_p4 = pnand %p872_p9, %p871_p8 }
  0x24   : > { %p874_p5 = pneg %p873_p4 }
  0x26   : > { %p879_p2 = pnand %p877_p10, %p874_p5 }
  0x28   : > { %882 = shalt.err (!%p879_p2)
}
  0x29   : > { %s883_s28 = scalar_lea.vmem %s180_s9, 128  ;;  %p891_p11 = scmp.lt.s32.totalorder %s180_s9, %s180_s9 }
  0x2a   : > { %p884_p0 = scmp.ne.s32.totalorder %s180_s9, %s883_s28  ;;  %p892_p6 = scmp.lt.s32.totalorder %s883_s28, %s883_s28 }
  0x2c   : > { %p886_p1 = pnand %p884_p0, %p872_p9  ;;  %p893_p13 = por %p892_p6, %p891_p11 }
  0x2e   : > { %p887_p12 = pneg %p886_p1 }
  0x30   : > { %p894_p3 = pnand %p893_p13, %p887_p12 }
  0x32   : > { %897 = shalt.err (!%p894_p3)
}
  0x33   : > { %777 = dma.hbm_to_vmem [thread:$0]  (!%p1141_p7), %s1353_s0, 128, %s180_s9, [#allocation3]  }
  0x34   : > { %s206_s14 = sand.u32 1, %s1030_s21   ;;  %s898_s17 = scalar_lea.hbm %s1333_s1, 1024 }
  0x35   : > { %p899_p1 = scmp.ne.s32.totalorder %s1333_s1, %s898_s17  ;;  %p905_p12 = scmp.lt.u32.totalorder %s898_s17, %s1333_s1 }
  0x37   : > { %p901_p6 = pnand %p899_p1, %p872_p9 }
  0x39   : > { %p902_p11 = pneg %p901_p6 }
  0x3b   : > { %p907_p13 = pnand %p905_p12, %p902_p11 }
  0x3d   : > { %910 = shalt.err (!%p907_p13)
}
  0x3e   : > { %s911_s9 = scalar_lea.vmem %s1151_s13, 1024  ;;  %p919_p5 = scmp.lt.s32.totalorder %s1151_s13, %s1151_s13 }
  0x3f   : > { %p912_p3 = scmp.ne.s32.totalorder %s1151_s13, %s911_s9  ;;  %p920_p10 = scmp.lt.s32.totalorder %s911_s9, %s911_s9 }
  0x41   : > { %p914_p8 = pnand %p912_p3, %p872_p9  ;;  %p921_p2 = por %p920_p10, %p919_p5 }
  0x43   : > { %p915_p4 = pneg %p914_p8 }
  0x45   : > { %p922_p0 = pnand %p921_p2, %p915_p4 }
  0x47   : > { %925 = shalt.err (!%p922_p0)
}
  0x48   : > { %s1034_s8 = smov 128   ;;  %s1035_s12 = smov 8  }
  0x49   : > { %780 = dma.hbm_to_vmem [thread:$0]  (!%p1141_p7), %s1333_s1, 1024, %s1151_s13, [#allocation6], %s1034_s8, %s1034_s8, %s1035_s12  }
  0x4a   : > { %s208_s17 = sand.u32 1, %s1026_s20   ;;  %s739_s25 = sshll.u32 %s1030_s21, 11 }
  0x4b   : > { %s699_s23 = sshll.u32 %s208_s17, 7  ;;  %s1206_s9 = scalar_lea.hbm %s1335_s3, %s739_s25 }
  0x4c   : > { %s210_s0 = scalar_lea.vmem [#allocation7], %s699_s23  ;;  %s1210_s10 = scalar_lea.sflag [#allocation3], %s206_s14 }
  0x4d   : > { %s217_s27 = sshll.u32 %s210_s0, 4  ;;  %s926_s15 = scalar_lea.hbm %s1206_s9, 2048  ;;  %s1208_s27 = int_to_ptr.vmem [resolvable:$true] %s217_s27 }
  0x4e   : > { %p927_p7 = scmp.ne.s32.totalorder %s1206_s9, %s926_s15  ;;  %p1354_p9 = scmp.ne.s32.totalorder %s1352_s11, 0 }
  0x4f   : > { %s931_s12 = scalar_lea.hbm %s1335_s3, 4096  ;;  %p932_p12 = scmp.lt.u32.totalorder %s1206_s9, %s1335_s3 }
  0x50   : > { %p928_p1 = pneg %p1354_p9  ;;  %p933_p13 = scmp.lt.u32.totalorder %s931_s12, %s926_s15 }
  0x51   : > { %p935_p8 = scmp.lt.u32.totalorder %s926_s15, %s1206_s9 }
  0x52   : > { %p929_p6 = pnand %p928_p1, %p927_p7  ;;  %p934_p3 = por %p933_p13, %p932_p12 }
  0x54   : > { %p930_p11 = pneg %p929_p6  ;;  %p936_p4 = por %p935_p8, %p934_p3 }
  0x56   : > { %p937_p5 = pnand %p936_p4, %p930_p11 }
  0x58   : > { %940 = shalt.err (!%p937_p5)
}
  0x59   : > { %s941_s0 = scalar_lea.vmem %s1208_s27, 2048  ;;  %s1036_s14 = smov [#allocation7]  }
  0x5a   : > { %p942_p10 = scmp.ne.s32.totalorder %s1208_s27, %s941_s0  ;;  %s946_s23 = sshll.u32 %s1036_s14, 4  ;;  %s947_s23 = int_to_ptr.vmem [resolvable:$false] %s946_s23 }
  0x5b   : > { %s948_s25 = scalar_lea.vmem %s947_s23, 4096  ;;  %p949_p7 = scmp.lt.s32.totalorder %s1208_s27, %s947_s23 }
  0x5c   : > { %p944_p2 = pnand %p942_p10, %p928_p1  ;;  %p950_p6 = scmp.lt.s32.totalorder %s948_s25, %s941_s0 }
  0x5e   : > { %p945_p0 = pneg %p944_p2  ;;  %p951_p12 = por %p950_p6, %p949_p7 }
  0x60   : > { %p952_p13 = pnand %p951_p12, %p945_p0 }
  0x62   : > { %955 = shalt.err (!%p952_p13)
}
  0x63   : > { %s1037_s26 = smov 64   ;;  %s1038_s28 = smov 4  }
  0x64   : > { %784 = dma.hbm_to_vmem [thread:$0]  (!%p1354_p9), %s1206_s9, 2048, %s1208_s27, %s1210_s10, %s1037_s26, %s1037_s26, %s1038_s28  }
  0x65   : > { %p1355_p1 = scmp.ne.s32.totalorder %s1349_s7, 0 }
  0x66   : > { %p1356_p11 = scmp.eq.s32.totalorder (!%p1355_p1), %s1092_s22, 0 }
  0x67   : > { %235 = sbr.rel (%p1355_p1) target bundleno = 614 (0x266), region = 40 }
  0x6e   : > { %1001 = dma.done.wait (%p1356_p11), [#allocation3], 128   ;;  %p1357_p3 = pmov %p1356_p11 }
  0x70   : > { %1003 = vsyncadd (%p1357_p3), [#allocation3], 4294967168  ;;  %p1358_p8 = pmov %p1357_p3 }
  0x71   : > { %p1359_p4 = pmov %p1357_p3 }
  0x72   : > { %1005 = dma.done.wait (%p1358_p8), [#allocation6], 1024  }
  0x73   : > { %1007 = vsyncadd (%p1359_p4), [#allocation6], 4294966272  ;;  %s245_s11 = sand.u32 1, %s1092_s22   ;;  %s1250_s27 = sand.u32 1, %s1022_s19  }
  0x74   : > { %s705_s7 = sshll.u32 %s1250_s27, 7  ;;  %s246_s9 = scalar_lea.sflag [#allocation3], %s245_s11 }
  0x75   : > { %s1253_s10 = scalar_lea.vmem [#allocation7], %s705_s7  ;;  %p1360_p9 = scmp.ne.s32.totalorder %s1346_s29, 0 }
  0x77   : > { %1009 = dma.done.wait (%p1360_p9), %s246_s9, 2048  }
  0x78   : > { %1011 = vsyncadd (%p1360_p9), %s246_s9, 4294965248  ;;  %v1039_v0 = vmov 0   ;;  %v834_v1 = vld [vmem:[#allocation5 + $0x4] ss:$8 sps:$4 sm:$0xff]   ;;  %v836_v2 = vld [vmem:[#allocation5] ss:$8 sps:$4 sm:$0xff]   ;;  %v295_v27 = vlaneseq }
  0x79   : > { %381 = vmatprep.mubr.bf16.mxu0 %v1039_v0  ;;  %349 = vmatprep.subr.bf16.mxu0 %v834_v1  ;;  %v837_v3 = vld [vmem:[#allocation5 + $0x14] ss:$8 sps:$4 sm:$0xff]   ;;  %v839_v4 = vld [vmem:[#allocation5 + $0x10] ss:$8 sps:$4 sm:$0xff]   ;;  %v840_v5 = vld [vmem:[#allocation5 + $0x24] ss:$8 sps:$4 sm:$0xff]  }
  0x7a   : > { %350 = vmatpush1.bf16.msra.mxu0 %v836_v2  ;;  %v842_v6 = vld [vmem:[#allocation5 + $0x20] ss:$8 sps:$4 sm:$0xff]   ;;  %v843_v7 = vld [vmem:[#allocation5 + $0x34] ss:$8 sps:$4 sm:$0xff]   ;;  %vm345_vm0 = vcmask 523264   ;;  %v296_v28 = vshrl.u32 %v295_v27, 7 }
  0x7b   : > { %351 = vmatprep.subr.bf16.mxu0 %v837_v3  ;;  %v845_v8 = vld [vmem:[#allocation5 + $0x30] ss:$8 sps:$4 sm:$0xff]   ;;  %v846_v11 = vld [vmem:[%s1253_s10 + $0x40] sm:$0xff]   ;;  %v848_v13 = vld [vmem:[%s1253_s10 + $0x48] sm:$0xff]   ;;  %p279_p5 = scmp.lt.s32.totalorder %s1092_s22, 1  ;;  %s706_s8 = sshll.u32 %s1250_s27, 3 }
  0x7c   : > { %v283_v9 = vld [vmem:[#allocation2] sm:$0xff]  ;;  %v847_v12 = vld [vmem:[%s1253_s10] sm:$0xff]   ;;  %740 = vmatprep.subr.bf16.mxu1 %v846_v11  ;;  %v849_v14 = vld [vmem:[%s1253_s10 + $0x8] sm:$0xff]   ;;  %v297_v29 = vsub.s32 0, %v296_v28  ;;  %v301_v31 = vsub.s32 1, %v296_v28  ;;  %s736_s0 = sshll.u32 %s1092_s22, 7 }
  0x7d   : > { %v284_v10 = vpack.c.bf16 %v283_v9, %v283_v9  ;;  %741 = vmatpush3.bf16.msra.mxu1 %v847_v12  ;;  %v850_v15 = vld [vmem:[%s1253_s10 + $0x50] sm:$0xff]   ;;  %v852_v17 = vld [vmem:[%s1253_s10 + $0x58] sm:$0xff]   ;;  %v854_v19 = vld [vmem:[%s1253_s10 + $0x60] sm:$0xff]   ;;  %s280_s13 = scalar_select %p279_p5, %s1092_s22, 1 }
  0x7e   : > { %352 = vmatpush1.bf16.msra.mxu0 %v839_v4  ;;  %742 = vmatprep.subr.bf16.mxu1 %v848_v13  ;;  %v851_v16 = vld [vmem:[%s1253_s10 + $0x10] sm:$0xff]   ;;  %v853_v18 = vld [vmem:[%s1253_s10 + $0x18] sm:$0xff]   ;;  %v855_v20 = vld [vmem:[%s1253_s10 + $0x20] sm:$0xff]   ;;  %s278_s14 = scalar_lea.vmem [#allocation8], %s706_s8  ;;  %s1288_s28 = scalar_lea.hbm %s1337_s5, %s736_s0 }
  0x7f   : > { %353 = vmatprep.subr.bf16.mxu0 %v840_v5  ;;  %v856_v21 = vld [vmem:[%s1253_s10 + $0x68] sm:$0xff]   ;;  %v858_v23 = vld [vmem:[%s1253_s10 + $0x70] sm:$0xff]   ;;  %v860_v25 = vld [vmem:[%s1253_s10 + $0x78] sm:$0xff]   ;;  %s281_s17 = scalar_lea.vmem %s1336_s4, %s280_s13  ;;  %s596_s23 = sshll.u32 %s278_s14, 4  ;;  %s1290_s23 = int_to_ptr.vmem [resolvable:$true] %s596_s23 }
  0x80   : > { %v857_v22 = vld [vmem:[%s1253_s10 + $0x28] sm:$0xff]   ;;  %v859_v24 = vld [vmem:[%s1253_s10 + $0x30] sm:$0xff]   ;;  %v861_v26 = vld [vmem:[%s1253_s10 + $0x38] sm:$0xff]   ;;  %s583_s11 = scalar_lea.sflag [#allocation4], %s1250_s27  ;;  %s956_s7 = scalar_lea.vmem %s1290_s23, 128 }
  0x81   : > { %743 = vmatpush3.bf16.msra.mxu1 %v849_v14  ;;  %v293_v30 = vld [vmem:[%s1334_s2] sm:$0x3]  ;;  %p957_p10 = scmp.ne.s32.totalorder %s1290_s23, %s956_s7  ;;  %p1361_p2 = scmp.ne.s32.totalorder %s1347_s30, 0 }
  0x82   : > { %354 = vmatpush1.bf16.msra.mxu0 %v842_v6  ;;  %744 = vmatprep.subr.bf16.mxu1 %v850_v15  ;;  %v298_v32 = vrot.slane %v293_v30, %v297_v29  ;;  %v302_v33 = vrot.slane %v293_v30, %v301_v31  ;;  %v718_v53 = vld [vmem:[%s281_s17] ss:$0 sm:$0xff]  ;;  %s1040_s22 = smov [#allocation8]  }
  0x83   : > { %355 = vmatprep.subr.bf16.mxu0 %v843_v7  ;;  %p958_p0 = pnand %p957_p10, %p1361_p2  ;;  %s960_s9 = sshll.u32 %s1040_s22, 4  ;;  %s961_s9 = int_to_ptr.vmem [resolvable:$false] %s960_s9 }
  0x84   : > { %s962_s10 = scalar_lea.vmem %s961_s9, 256  ;;  %p963_p6 = scmp.lt.s32.totalorder %s1290_s23, %s961_s9 }
  0x85   : > { %745 = vmatpush3.bf16.msra.mxu1 %v851_v16  ;;  %p959_p7 = pneg %p958_p0  ;;  %p964_p12 = scmp.lt.s32.totalorder %s962_s10, %s956_s7 }
  0x86   : > { %356 = vmatpush1.bf16.msra.mxu0 %v845_v8  ;;  %746 = vmatprep.subr.bf16.mxu1 %v852_v17 }
  0x87   : > { %p965_p13 = por %p964_p12, %p963_p6 }
  0x89   : > { %715 = vmatmul.mubr.msk.bf16.vlgmr.msra.gmra.mrb[0].mxu0 %vm345_vm0, %v284_v10  ;;  %747 = vmatpush3.bf16.msra.mxu1 %v853_v18  ;;  %p966_p1 = pnand %p965_p13, %p959_p7 }
  0x8a   : > { %748 = vmatprep.subr.bf16.mxu1 %v854_v19 }
  0x8d   : > { %749 = vmatpush3.bf16.msra.mxu1 %v855_v20 }
  0x8e   : > { %750 = vmatprep.subr.bf16.mxu1 %v856_v21 }
  0x91   : > { %751 = vmatpush3.bf16.msra.mxu1 %v857_v22 }
  0x92   : > { %752 = vmatprep.subr.bf16.mxu1 %v858_v23 }
  0x95   : > { %753 = vmatpush3.bf16.msra.mxu1 %v859_v24 }
  0x96   : > { %754 = vmatprep.subr.bf16.mxu1 %v860_v25 }
  0x99   : > { %755 = vmatpush3.bf16.msra.mxu1 %v861_v26 }
 0x15c   : > { %v383_v34 = vpop.f32.mrb[0].mxu0 }
 0x15d   : > { %v384_v35 = vadd.f32 %v383_v34, %v298_v32  ;;  %v385_v36 = vpop.f32.mrb[1].mxu0 }
 0x15e   : > { %v386_v37 = vadd.f32 %v385_v36, %v302_v33  ;;  %v387_v38 = vpop.f32.mrb[2].mxu0 }
 0x15f   : > { %v716_v39 = vmul.f32 -1.442695, %v384_v35  ;;  %v388_v40 = vpop.f32.mrb[3].mxu0 }
 0x160   : > { %v717_v41 = vmul.f32 -1.442695, %v386_v37 }
 0x161   : > { %862 = vpow2.f32 %v716_v39 }
 0x162   : > { %864 = vpow2.f32 %v717_v41 }
 0x16b   : > { %v863_v42 = vpop.eup %862 }
 0x16c   : > { %v865_v43 = vpop.eup %864  ;;  %v396_v44 = vadd.f32 1.0, %v863_v42 }
 0x16d   : > { %v397_v45 = vadd.f32 1.0, %v865_v43 }
 0x16e   : > { %866 = vrcp.f32 %v396_v44 }
 0x16f   : > { %868 = vrcp.f32 %v397_v45 }
 0x178   : > { %v867_v46 = vpop.eup %866 }
 0x179   : > { %v869_v47 = vpop.eup %868  ;;  %v402_v48 = vmul.f32 %v867_v46, %v384_v35 }
 0x17a   : > { %v403_v49 = vmul.f32 %v869_v47, %v386_v37 }
 0x17b   : > { %v404_v51 = vpack.c.bf16 %v402_v48, %v402_v48 }
 0x17c   : > { %v405_v50 = vpack.c.bf16 %v403_v49, %v403_v49 }
 0x17e   : > { %573 = vmatprep.mubr.bf16.mxu1 %v405_v50 }
 0x17f   : > { %574 = vmatmul.mubr.bf16.vlgmr.msra.gmra.mrb[0].mxu1 %v404_v51 }
 0x252   : > { %v756_v52 = vpop.f32.mrb[0].mxu1 }
 0x253   : > { %v757_v54 = vpop.f32.mrb[1].mxu1 }
 0x254   : > { %v758_v55 = vadd.f32 %v757_v54, %v756_v52  ;;  %v759_v56 = vpop.f32.mrb[2].mxu1 }
 0x255   : > { %v760_v57 = vpop.f32.mrb[3].mxu1 }
 0x256   : > { %v576_v58 = vadd.f32 %v758_v55, %v718_v53 }
 0x258   : > { %581 = vst [vmem:[%s278_s14] sm:$0xff] %v576_v58 }
 0x259   : > { %969 = shalt.err (!%p966_p1)
}
 0x25a   : > { %s970_s27 = scalar_lea.hbm %s1288_s28, 128  ;;  %s974_s13 = scalar_lea.hbm %s1337_s5, 256 }
 0x25b   : > { %p971_p11 = scmp.ne.s32.totalorder %s1288_s28, %s970_s27  ;;  %p975_p4 = scmp.lt.u32.totalorder %s1288_s28, %s1337_s5 }
 0x25c   : > { %p976_p9 = scmp.lt.u32.totalorder %s974_s13, %s970_s27  ;;  %p978_p10 = scmp.lt.u32.totalorder %s970_s27, %s1288_s28 }
 0x25d   : > { %p972_p3 = pnand %p971_p11, %p1361_p2 }
 0x25e   : > { %p977_p5 = por %p976_p9, %p975_p4 }
 0x25f   : > { %p973_p8 = pneg %p972_p3 }
 0x260   : > { %p979_p0 = por %p978_p10, %p977_p5 }
 0x262   : > { %p980_p7 = pnand %p979_p0, %p973_p8 }
 0x264   : > { %983 = shalt.err (!%p980_p7)
}
 0x265   : > { %772 = dma.vmem_to_hbm [thread:$0]  (%p1361_p2), %s1290_s23, 128, %s1288_s28, %s583_s11  }
 0x266 PF: > { %s608_s16 = sand.u32 1, %s1018_s18   ;;  %p1362_p6 = scmp.ne.s32.totalorder %s1348_s6, 0 }
 0x267   : > { %p1363_p12 = scmp.ge.s32.totalorder %s1030_s21, 2  ;;  %s609_s17 = scalar_lea.sflag [#allocation4], %s608_s16 }
 0x269   : > { %p786_p13 = pnand %p1363_p12, %p1362_p6 }
 0x26b   : > { %1013 = dma.done.wait (!%p786_p13), %s609_s17, 128  }
 0x26c   : > { %1015 = vsyncadd (!%p786_p13), %s609_s17, 4294967168  ;;  %s1364_s0 = sld [smem:[#allocation13_spill]]  ;;  %p17_p1 = scmp.ge.s32.totalorder %s1096_s24, 4  }
 0x26d   : > { %s1365_s18 = smov %s1022_s19  ;;  %s1366_s19 = smov %s1026_s20 }
 0x26e   : > { %s1368_s21 = smov %s1096_s24  ;;  %19 = sbr.rel (!%p17_p1) target bundleno = 7 (0x7), region = 95 }
 0x272   : > { %s1367_s20 = smov %s1364_s0 }
 0x275   :  { %614 = vsyncpa [#allocation3], 1 }
 0x276   :  { %616 = vsyncpa [#allocation3 + $0x1], 1 }
 0x277   :  { %617 = vsyncpa [#allocation6], 1 }
 0x278   :  { %618 = vsyncpa [#allocation4], 1 }
 0x279   :  { %620 = vsyncpa [#allocation4 + $0x1], 1 }

</bundles_post_ra>
